<compile_context>
chip_gen: v7x
topology: tpu7x:2x2x1
jax: 0.10.0
libtpu: 0.0.40
codegen_flags: <defaults>
</compile_context>

<pallas_src>
from functools import partial
from typing import NamedTuple

import jax
import jax.numpy as jnp
from jax.experimental import pallas as pl
from jax.experimental.pallas import tpu as pltpu

_ALLOWED_ACTIVATIONS = ("ReLU", "Tanh", "Sigmoid", "Identity")
_IDEMPOTENT_ACTIVATIONS = ("ReLU", "Identity")


def _act(name, x):
    if name == "ReLU":
        return jnp.maximum(x, 0.0)
    if name == "Tanh":
        return jnp.tanh(x)
    if name == "Sigmoid":
        return jax.nn.sigmoid(x)
    if name == "Identity":
        return x
    raise ValueError(f"activation fn not allowed: {name}")


def _round_up(x, m):
    return ((x + m - 1) // m) * m


def _lane_multiple(dim):
    # v6e/v7x MXUs are 2x256x256: pad wide dims to 256 so every MXU pass is
    # full; keep 128 (v5e's perfect 4x128x128 tile) for small dims where the
    # extra padded FLOPs would dominate.
    return 256 if dim >= 512 else 128


def _vmem_budget_bytes():
    """~0.8x of the physical per-core VMEM (v7x: 64 MiB, v5e/v6e: 128 MiB)."""
    cap = 64 * 1024 * 1024  # conservative fallback = v7x per-TensorCore VMEM
    try:
        cap = int(pltpu.get_tpu_info().vmem_capacity_bytes)
    except Exception:
        pass
    return int(0.8 * cap)


def _tile_vmem_bytes(tm, k, npad, x_itemsize):
    # double-buffered x tile + double-buffered f32 output tile
    return 2 * tm * k * x_itemsize + 2 * tm * npad * 4


def _fc_kernel(*refs, n_hidden, activation, compute_dtype, act_dtype):
    # refs = (x_ref, w0, b0, w1, b1, ..., w_{L-1}, b_{L-1}, out_ref)
    x_ref = refs[0]
    out_ref = refs[-1]
    wb = refs[1:-1]
    ws = wb[0::2]
    bs = wb[1::2]
    idempotent = activation in _IDEMPOTENT_ACTIVATIONS

    # Layer 0: Linear(input_size, hidden) -> Act.  x is read in its native
    # dtype and cast to the MXU dtype on the VPU (hidden under the matmul).
    h = jnp.dot(x_ref[...].astype(compute_dtype), ws[0][...],
                preferred_element_type=jnp.float32)
    h = h.astype(act_dtype) + bs[0][...].astype(act_dtype)
    h = _act(activation, h)

    # Middle blocks: (Act -> Linear(hidden, hidden)) x (n_hidden - 2).
    for i in range(1, n_hidden - 1):
        # The i == 1 activation is back-to-back with layer 0's activation
        # (faithful to the module's nn.Sequential); skip the redundant VPU
        # pass when the activation is idempotent.
        if not (i == 1 and idempotent):
            h = _act(activation, h)
        h = jnp.dot(h.astype(compute_dtype), ws[i][...],
                    preferred_element_type=jnp.float32)
        h = h.astype(act_dtype) + bs[i][...].astype(act_dtype)

    # Final block: Act -> Linear(hidden, n_classes); bias add kept in f32.
    # (For n_hidden == 2 this Act is back-to-back with layer 0's Act.)
    if not (n_hidden == 2 and idempotent):
        h = _act(activation, h)
    h = jnp.dot(h.astype(compute_dtype), ws[n_hidden - 1][...],
                preferred_element_type=jnp.float32) + bs[n_hidden - 1][...]
    out_ref[...] = h.astype(out_ref.dtype)


class FCParams(NamedTuple):
    wb: tuple            # interleaved padded/cast (w0, b0, w1, b1, ...)
    n_hidden: int
    input_size: int
    n_classes: int
    out_padded: int
    in_dims: tuple
    out_dims: tuple
    compute_dtype: object


def prepare_fc_params(weights, biases, *, compute_dtype=jnp.bfloat16):
    """Pad/cast FC parameters ONCE at model-setup time (hoisted out of the
    per-call forward path so repeated inference never re-copies weights)."""
    n_hidden = len(weights)
    assert len(biases) == n_hidden and n_hidden >= 2, "n_hidden has to be >= 2"
    input_size = weights[0].shape[0]
    hidden_dim = weights[0].shape[1]
    n_classes = weights[-1].shape[1]

    hp = _round_up(hidden_dim, _lane_multiple(hidden_dim))
    npad = _round_up(n_classes, _lane_multiple(n_classes))

    in_dims = (input_size,) + (hp,) * (n_hidden - 1)   # layer-0 K left unpadded
    out_dims = (hp,) * (n_hidden - 1) + (npad,)

    wb = []
    for li, (w, b) in enumerate(zip(weights, biases)):
        w_pad = jnp.pad(w.astype(compute_dtype),
                        ((0, in_dims[li] - w.shape[0]),
                         (0, out_dims[li] - w.shape[1])))
        b_pad = jnp.pad(b.astype(jnp.float32), (0, out_dims[li] - b.shape[0]))
        wb.append(w_pad)
        wb.append(b_pad.reshape(1, -1))

    return FCParams(wb=tuple(wb), n_hidden=n_hidden, input_size=input_size,
                    n_classes=n_classes, out_padded=npad,
                    in_dims=in_dims, out_dims=out_dims,
                    compute_dtype=compute_dtype)


def fc_forward(x_nchw, params, *, activation="ReLU", act_dtype=jnp.float32,
               block_m=512):
    """FC forward pass with a single fused, batch-tiled Pallas kernel.

    x_nchw:    (B, ...) float32, prod(trailing dims) == params.input_size
    params:    FCParams from prepare_fc_params
    act_dtype: dtype for bias adds / activations. float32 is safe everywhere
               (v5e has no bf16 VPU/EUP); jnp.bfloat16 halves VPU/EUP traffic
               on v6e/v7x at a minor accuracy cost.
    """
    if activation not in _ALLOWED_ACTIVATIONS:
        raise ValueError(f"activation fn not allowed: {activation}")

    B = x_nchw.shape[0]
    input_size = 1
    for d in x_nchw.shape[1:]:
        input_size *= d
    assert input_size == params.input_size
    n_hidden = params.n_hidden
    npad = params.out_padded

    # No wrapper-side cast/pad of x: flatten only; the kernel reads the native
    # dtype with a full-extent K block and casts on the VPU.
    x2d = x_nchw.reshape(B, input_size)
    x_itemsize = x2d.dtype.itemsize

    param_bytes = sum(int(a.size) * a.dtype.itemsize for a in params.wb)
    budget = _vmem_budget_bytes()
    # TODO(synk): if param_bytes > budget // 2, switch to the streamed-weight
    #             pipeline described in the module docstring.

    # ---- batch tiling --------------------------------------------------------
    if B < 16:
        tm, b_padded = B, B                  # single full-extent tile, no pad
    else:
        n_tiles = max(2, -(-B // block_m))   # >= 2 tiles so both v7x TCs work
        n_tiles += n_tiles % 2               # even count -> balanced TC split
        tm = _round_up(-(-B // n_tiles), 8)
        # keep (double-buffered x/out tiles + single-buffered params) in VMEM
        while tm > 8 and (param_bytes
                          + _tile_vmem_bytes(tm, input_size, npad, x_itemsize)
                          > budget):
            tm = max(8, _round_up(tm // 2, 8))
        b_padded = _round_up(B, tm)

    if b_padded > B:
        x2d = jnp.pad(x2d, ((0, b_padded - B), (0, 0)))
    grid = (b_padded // tm,)

    # ---- block specs ---------------------------------------------------------
    in_specs = [pl.BlockSpec((tm, input_size), lambda i: (i, 0))]
    for a in params.wb:
        # Constant block index: fetched once and kept resident.  Buffered(1)
        # drops the useless second pipeline buffer (halves resident VMEM).
        in_specs.append(pl.BlockSpec(a.shape, lambda i: (0, 0),
                                     pipeline_mode=pl.Buffered(1)))
    out_spec = pl.BlockSpec((tm, npad), lambda i: (i, 0))

    # ---- scheduling hints ----------------------------------------------------
    flops = 2 * b_padded * sum(k * n for k, n in zip(params.in_dims,
                                                     params.out_dims))
    transc = (b_padded * params.in_dims[1] * n_hidden
              if activation in ("Tanh", "Sigmoid") else 0)
    bytes_accessed = (int(x2d.size) * x_itemsize + param_bytes
                      + b_padded * npad * 4)

    vmem_limit = int(min(
        budget,
        max(32 * 1024 * 1024,
            1.25 * (param_bytes
                    + _tile_vmem_bytes(tm, input_size, npad, x_itemsize)))))

    kernel = partial(_fc_kernel, n_hidden=n_hidden, activation=activation,
                     compute_dtype=params.compute_dtype, act_dtype=act_dtype)

    out_padded = pl.pallas_call(
        kernel,
        out_shape=jax.ShapeDtypeStruct((b_padded, npad), jnp.float32),
        grid=grid,
        in_specs=in_specs,
        out_specs=out_spec,
        compiler_params=pltpu.CompilerParams(
            dimension_semantics=("parallel",),
            vmem_limit_bytes=vmem_limit),
        cost_estimate=pl.CostEstimate(
            flops=int(flops), transcendentals=int(transc),
            bytes_accessed=int(bytes_accessed)),
    )(x2d, *params.wb)

    return out_padded[:B, :params.n_classes]


def _fc_reference(x_nchw, weights, biases, *, n_hidden, activation="ReLU",
                  compute_dtype=jnp.float32):
    """Pure-JAX reference mirroring FC's nn.Sequential (bn=False)."""
    B = x_nchw.shape[0]
    h = x_nchw.reshape(B, -1)

    def dot(a, w):
        return jnp.dot(a.astype(compute_dtype), w.astype(compute_dtype),
                       preferred_element_type=jnp.float32)

    h = dot(h, weights[0]) + biases[0]
    h = _act(activation, h)
    for i in range(1, n_hidden - 1):
        h = _act(activation, h)
        h = dot(h, weights[i]) + biases[i]
    h = _act(activation, h)
    return dot(h, weights[n_hidden - 1]) + biases[n_hidden - 1]


if __name__ == "__main__":
    # Small config consistent with FC: input_shape=(1,16,16) -> input_size=256,
    # n_hidden=3, hidden_dim=32, n_classes=10, bn=False.
    n_hidden = 3
    hidden_dim = 32
    input_shape = (1, 16, 16)
    n_classes = 10
    batch = 2

    input_size = 1
    for d in input_shape:
        input_size *= d

    key = jax.random.PRNGKey(0)
    keys = jax.random.split(key, 2 * n_hidden + 1)

    # Deterministic parameter init (PyTorch-Linear-style uniform bounds).
    dims = [input_size] + [hidden_dim] * (n_hidden - 1) + [n_classes]
    weights, biases = [], []
    for li in range(n_hidden):
        fan_in, fan_out = dims[li], dims[li + 1]
        bound = 1.0 / (fan_in ** 0.5)
        w = jax.random.uniform(keys[2 * li], (fan_in, fan_out),
                               minval=-bound, maxval=bound, dtype=jnp.float32)
        b = jax.random.uniform(keys[2 * li + 1], (fan_out,),
                               minval=-bound, maxval=bound, dtype=jnp.float32)
        weights.append(w)
        biases.append(b)

    x = jax.random.normal(keys[-1], (batch,) + input_shape, dtype=jnp.float32)

    # Parameters padded/cast ONCE here (setup time), not per forward call.
    params_bf16 = prepare_fc_params(weights, biases, compute_dtype=jnp.bfloat16)
    params_f32 = prepare_fc_params(weights, biases, compute_dtype=jnp.float32)

    # Config A: ReLU, bf16 MXU inputs, f32 bias/activation (v5e-safe default).
    out_a = fc_forward(x, params_bf16, activation="ReLU")
    out_a = jax.block_until_ready(out_a)
    ref_a_match = _fc_reference(x, weights, biases, n_hidden=n_hidden,
                                activation="ReLU", compute_dtype=jnp.bfloat16)
    ref_a_f32 = _fc_reference(x, weights, biases, n_hidden=n_hidden,
                              activation="ReLU", compute_dtype=jnp.float32)
    assert out_a.shape == (batch, n_classes)
    assert jnp.allclose(out_a, ref_a_match, atol=2e-3, rtol=2e-3)
    assert jnp.allclose(out_a, ref_a_f32, atol=6e-2, rtol=6e-2)

    # Config B: Sigmoid (non-idempotent -> exercises the faithful back-to-back
    # activation and padded-lane safety), full f32 compute.
    out_b = fc_forward(x, params_f32, activation="Sigmoid")
    out_b = jax.block_until_ready(out_b)
    ref_b = _fc_reference(x, weights, biases, n_hidden=n_hidden,
                          activation="Sigmoid", compute_dtype=jnp.float32)
    assert out_b.shape == (batch, n_classes)
    assert jnp.allclose(out_b, ref_b, atol=1e-3, rtol=1e-3)

    # Config C: v6e/v7x fast path -- bf16 matmul AND bf16 bias/activation.
    out_c = fc_forward(x, params_bf16, activation="ReLU",
                       act_dtype=jnp.bfloat16)
    out_c = jax.block_until_ready(out_c)
    assert out_c.shape == (batch, n_classes)
    assert jnp.allclose(out_c, ref_a_f32, atol=5e-2, rtol=5e-2)

    print("KERNEL_OK")
</pallas_src>

<mosaic_0001>
module attributes {stable_mosaic.version = 11 : i64} {
  func.func @_fc_kernel(%arg0: i32, %arg1: memref<2x256xf32, #tpu.memory_space<vmem>>, %arg2: memref<256x128xbf16, #tpu.memory_space<vmem>>, %arg3: memref<1x128xf32, #tpu.memory_space<vmem>>, %arg4: memref<128x128xbf16, #tpu.memory_space<vmem>>, %arg5: memref<1x128xf32, #tpu.memory_space<vmem>>, %arg6: memref<128x128xbf16, #tpu.memory_space<vmem>>, %arg7: memref<1x128xf32, #tpu.memory_space<vmem>>, %arg8: memref<2x128xf32, #tpu.memory_space<vmem>>) attributes {dimension_semantics = [#tpu.dimension_semantics<parallel>], iteration_bounds = array<i64: 1>, scalar_prefetch = 0 : i64, scratch_operands = 0 : i64, tpu.core_type = #tpu.core_type<tc>, window_params = [{transform_indices = @transform_0, window_bounds = array<i64: 2, 256>}, {pipeline_mode = #tpu.pipeline_mode<synchronous>, transform_indices = @transform_1, window_bounds = array<i64: 256, 128>}, {pipeline_mode = #tpu.pipeline_mode<synchronous>, transform_indices = @transform_2, window_bounds = array<i64: 1, 128>}, {pipeline_mode = #tpu.pipeline_mode<synchronous>, transform_indices = @transform_3, window_bounds = array<i64: 128, 128>}, {pipeline_mode = #tpu.pipeline_mode<synchronous>, transform_indices = @transform_4, window_bounds = array<i64: 1, 128>}, {pipeline_mode = #tpu.pipeline_mode<synchronous>, transform_indices = @transform_5, window_bounds = array<i64: 128, 128>}, {pipeline_mode = #tpu.pipeline_mode<synchronous>, transform_indices = @transform_6, window_bounds = array<i64: 1, 128>}, {transform_indices = @transform_7, window_bounds = array<i64: 2, 128>}]} {
    %c0 = arith.constant 0 : index
    %c0_0 = arith.constant 0 : index
    %0 = vector.load %arg1[%c0, %c0_0] : memref<2x256xf32, #tpu.memory_space<vmem>>, vector<2x256xf32>
    %1 = arith.truncf %0 : vector<2x256xf32> to vector<2x256xbf16>
    %c0_1 = arith.constant 0 : index
    %c0_2 = arith.constant 0 : index
    %2 = vector.load %arg2[%c0_1, %c0_2] : memref<256x128xbf16, #tpu.memory_space<vmem>>, vector<256x128xbf16>
    %cst = arith.constant dense<0.000000e+00> : vector<2x128xf32>
    %3 = tpu.matmul %1, %2, %cst {dimension_numbers = #tpu.dot_dimension_numbers<[1], [0], [0], [1], [0, 0, 1, 1], [], []>} : vector<2x256xbf16>, vector<256x128xbf16>, vector<2x128xf32> -> vector<2x128xf32>
    %c0_3 = arith.constant 0 : index
    %c0_4 = arith.constant 0 : index
    %4 = vector.load %arg3[%c0_3, %c0_4] : memref<1x128xf32, #tpu.memory_space<vmem>>, vector<1x128xf32>
    %5 = vector.broadcast %4 : vector<1x128xf32> to vector<2x128xf32>
    %6 = arith.addf %3, %5 : vector<2x128xf32>
    %cst_5 = arith.constant 0.000000e+00 : f32
    %7 = vector.broadcast %cst_5 : f32 to vector<2x128xf32>
    %8 = arith.maximumf %6, %7 : vector<2x128xf32>
    %9 = arith.truncf %8 : vector<2x128xf32> to vector<2x128xbf16>
    %c0_6 = arith.constant 0 : index
    %c0_7 = arith.constant 0 : index
    %10 = vector.load %arg4[%c0_6, %c0_7] : memref<128x128xbf16, #tpu.memory_space<vmem>>, vector<128x128xbf16>
    %cst_8 = arith.constant dense<0.000000e+00> : vector<2x128xf32>
    %11 = tpu.matmul %9, %10, %cst_8 {dimension_numbers = #tpu.dot_dimension_numbers<[1], [0], [0], [1], [0, 0, 1, 1], [], []>} : vector<2x128xbf16>, vector<128x128xbf16>, vector<2x128xf32> -> vector<2x128xf32>
    %c0_9 = arith.constant 0 : index
    %c0_10 = arith.constant 0 : index
    %12 = vector.load %arg5[%c0_9, %c0_10] : memref<1x128xf32, #tpu.memory_space<vmem>>, vector<1x128xf32>
    %13 = vector.broadcast %12 : vector<1x128xf32> to vector<2x128xf32>
    %14 = arith.addf %11, %13 : vector<2x128xf32>
    %cst_11 = arith.constant 0.000000e+00 : f32
    %15 = vector.broadcast %cst_11 : f32 to vector<2x128xf32>
    %16 = arith.maximumf %14, %15 : vector<2x128xf32>
    %17 = arith.truncf %16 : vector<2x128xf32> to vector<2x128xbf16>
    %c0_12 = arith.constant 0 : index
    %c0_13 = arith.constant 0 : index
    %18 = vector.load %arg6[%c0_12, %c0_13] : memref<128x128xbf16, #tpu.memory_space<vmem>>, vector<128x128xbf16>
    %cst_14 = arith.constant dense<0.000000e+00> : vector<2x128xf32>
    %19 = tpu.matmul %17, %18, %cst_14 {dimension_numbers = #tpu.dot_dimension_numbers<[1], [0], [0], [1], [0, 0, 1, 1], [], []>} : vector<2x128xbf16>, vector<128x128xbf16>, vector<2x128xf32> -> vector<2x128xf32>
    %c0_15 = arith.constant 0 : index
    %c0_16 = arith.constant 0 : index
    %20 = vector.load %arg7[%c0_15, %c0_16] : memref<1x128xf32, #tpu.memory_space<vmem>>, vector<1x128xf32>
    %21 = vector.broadcast %20 : vector<1x128xf32> to vector<2x128xf32>
    %22 = arith.addf %19, %21 : vector<2x128xf32>
    %c0_17 = arith.constant 0 : index
    %c0_18 = arith.constant 0 : index
    %23 = vector.load %arg8[%c0_17, %c0_18] : memref<2x128xf32, #tpu.memory_space<vmem>>, vector<2x128xf32>
    tpu.vector_store %arg8[%c0_17, %c0_18], %22 {strides = array<i32>} : memref<2x128xf32, #tpu.memory_space<vmem>>, vector<2x128xf32>,
    return
  }
  func.func @transform_0(%arg0: i32) -> (i32, i32) {
    %c0_i32 = arith.constant 0 : i32
    %c0_i32_0 = arith.constant 0 : i32
    return %arg0, %c0_i32 : i32, i32
  }
  func.func @transform_1(%arg0: i32) -> (i32, i32) {
    %c0_i32 = arith.constant 0 : i32
    %c0_i32_0 = arith.constant 0 : i32
    %c0_i32_1 = arith.constant 0 : i32
    return %c0_i32, %c0_i32_0 : i32, i32
  }
  func.func @transform_2(%arg0: i32) -> (i32, i32) {
    %c0_i32 = arith.constant 0 : i32
    %c0_i32_0 = arith.constant 0 : i32
    %c0_i32_1 = arith.constant 0 : i32
    return %c0_i32, %c0_i32_0 : i32, i32
  }
  func.func @transform_3(%arg0: i32) -> (i32, i32) {
    %c0_i32 = arith.constant 0 : i32
    %c0_i32_0 = arith.constant 0 : i32
    %c0_i32_1 = arith.constant 0 : i32
    return %c0_i32, %c0_i32_0 : i32, i32
  }
  func.func @transform_4(%arg0: i32) -> (i32, i32) {
    %c0_i32 = arith.constant 0 : i32
    %c0_i32_0 = arith.constant 0 : i32
    %c0_i32_1 = arith.constant 0 : i32
    return %c0_i32, %c0_i32_0 : i32, i32
  }
  func.func @transform_5(%arg0: i32) -> (i32, i32) {
    %c0_i32 = arith.constant 0 : i32
    %c0_i32_0 = arith.constant 0 : i32
    %c0_i32_1 = arith.constant 0 : i32
    return %c0_i32, %c0_i32_0 : i32, i32
  }
  func.func @transform_6(%arg0: i32) -> (i32, i32) {
    %c0_i32 = arith.constant 0 : i32
    %c0_i32_0 = arith.constant 0 : i32
    %c0_i32_1 = arith.constant 0 : i32
    return %c0_i32, %c0_i32_0 : i32, i32
  }
  func.func @transform_7(%arg0: i32) -> (i32, i32) {
    %c0_i32 = arith.constant 0 : i32
    %c0_i32_0 = arith.constant 0 : i32
    return %arg0, %c0_i32 : i32, i32
  }
}

</mosaic_0001>

<bundles_post_ra>
// kernel: tpu_custom_call.1
= control target key start
LH: loop header
LB: loop body
LE: loop exit
PB: predicated region body
PF: predicated region fallthrough
CT: control target
= control target key end

     0   :  { %12 = vsyncpa [#allocation3], 0  ;;  %s934_s0 = inlined_call_operand.hbm [shape: f32[2,256], index: 0, kind: input, shape index: {}]   ;;  %s935_s1 = inlined_call_operand.hbm [shape: bf16[256,128], index: 1, kind: input, shape index: {}]   ;;  %s936_s2 = inlined_call_operand.vmem [shape: f32[1,128], index: 2, kind: input, shape index: {}]   ;;  %s937_s3 = inlined_call_operand.hbm [shape: bf16[128,128], index: 3, kind: input, shape index: {}]   ;;  %s938_s4 = inlined_call_operand.vmem [shape: f32[1,128], index: 4, kind: input, shape index: {}]   ;;  %s939_s5 = inlined_call_operand.hbm [shape: bf16[128,128], index: 5, kind: input, shape index: {}]   ;;  %s940_s6 = inlined_call_operand.vmem [shape: f32[1,128], index: 6, kind: input, shape index: {}]   ;;  %s941_s7 = inlined_call_operand.hbm [shape: f32[2,128], index: 7, kind: output, shape index: {}]  }
   0x1   :  { %13 = vsyncpa [#allocation6], 0 }
   0x2   :  { %14 = vsyncpa [#allocation9], 0 }
   0x3   :  { %15 = vsyncpa [#allocation4], 0  ;;  %s789_s24 = smov [#allocation5]   ;;  %s671_s28 = scalar_lea.hbm %s935_s1, 2048 }
   0x4   :  { %s31_s25 = sshll.u32 %s789_s24, 4  ;;  %p672_p0 = scmp.ne.s32.totalorder %s935_s1, %s671_s28  ;;  %s32_s25 = int_to_ptr.vmem [resolvable:$true] %s31_s25 }
   0x5   :  { %p675_p1 = scmp.lt.u32.totalorder %s671_s28, %s935_s1 }
   0x7   :  { %p677_p2 = pnand %p675_p1, %p672_p0 }
   0x9   :  { %680 = shalt.err (!%p677_p2)
}
   0xa   :  { %s681_s10 = scalar_lea.vmem %s32_s25, 2048  ;;  %p686_p4 = scmp.lt.s32.totalorder %s32_s25, %s32_s25 }
   0xb   :  { %p682_p3 = scmp.ne.s32.totalorder %s32_s25, %s681_s10  ;;  %p687_p5 = scmp.lt.s32.totalorder %s681_s10, %s681_s10 }
   0xd   :  { %p688_p6 = por %p687_p5, %p686_p4 }
   0xf   :  { %p689_p7 = pnand %p688_p6, %p682_p3 }
  0x11   :  { %692 = shalt.err (!%p689_p7)
}
  0x12   :  { %s790_s11 = smov 64   ;;  %s791_s12 = smov 4  }
  0x13   :  { %37 = dma.hbm_to_vmem [thread:$0]  %s935_s1, 2048, %s32_s25, [#allocation6], %s790_s11, %s790_s11, %s791_s12  }
  0x14   :  { %s792_s15 = smov [#allocation2]   ;;  %s793_s17 = smov [#allocation7]  }
  0x15   :  { %s22_s16 = sshll.u32 %s792_s15, 4  ;;  %s45_s18 = sshll.u32 %s793_s17, 4  ;;  %s23_s16 = int_to_ptr.vmem [resolvable:$true] %s22_s16  ;;  %s46_s18 = int_to_ptr.vmem [resolvable:$true] %s45_s18 }
  0x16   :  { %s693_s21 = scalar_lea.hbm %s934_s0, 64 }
  0x17   :  { %p694_p8 = scmp.ne.s32.totalorder %s934_s0, %s693_s21  ;;  %p697_p9 = scmp.lt.u32.totalorder %s693_s21, %s934_s0 }
  0x19   :  { %p699_p10 = pnand %p697_p9, %p694_p8 }
  0x1b   :  { %702 = shalt.err (!%p699_p10)
}
  0x1c   :  { %s703_s1 = scalar_lea.vmem %s23_s16, 64  ;;  %p708_p12 = scmp.lt.s32.totalorder %s23_s16, %s23_s16 }
  0x1d   :  { %p704_p11 = scmp.ne.s32.totalorder %s23_s16, %s703_s1  ;;  %p709_p13 = scmp.lt.s32.totalorder %s703_s1, %s703_s1 }
  0x1f   :  { %p710_p0 = por %p709_p13, %p708_p12 }
  0x21   :  { %p711_p1 = pnand %p710_p0, %p704_p11 }
  0x23   :  { %714 = shalt.err (!%p711_p1)
}
  0x24   :  { %25 = dma.hbm_to_vmem [thread:$0]  %s934_s0, 64, %s23_s16, [#allocation3]  }
  0x25   :  { %s715_s30 = scalar_lea.hbm %s937_s3, 1024 }
  0x26   :  { %p716_p2 = scmp.ne.s32.totalorder %s937_s3, %s715_s30  ;;  %p719_p3 = scmp.lt.u32.totalorder %s715_s30, %s937_s3 }
  0x28   :  { %p721_p4 = pnand %p719_p3, %p716_p2 }
  0x2a   :  { %724 = shalt.err (!%p721_p4)
}
  0x2b   :  { %s725_s14 = scalar_lea.vmem %s46_s18, 1024  ;;  %p730_p6 = scmp.lt.s32.totalorder %s46_s18, %s46_s18 }
  0x2c   :  { %p726_p5 = scmp.ne.s32.totalorder %s46_s18, %s725_s14  ;;  %p731_p7 = scmp.lt.s32.totalorder %s725_s14, %s725_s14 }
  0x2e   :  { %p732_p8 = por %p731_p7, %p730_p6 }
  0x30   :  { %p733_p9 = pnand %p732_p8, %p726_p5 }
  0x32   :  { %736 = shalt.err (!%p733_p9)
}
  0x33   :  { %51 = dma.hbm_to_vmem [thread:$0]  %s937_s3, 1024, %s46_s18, [#allocation6], %s790_s11, %s790_s11, %s791_s12  }
  0x34   :  { %s794_s16 = smov [#allocation8]   ;;  %s737_s21 = scalar_lea.hbm %s939_s5, 1024 }
  0x35   :  { %s59_s17 = sshll.u32 %s794_s16, 4  ;;  %p738_p10 = scmp.ne.s32.totalorder %s939_s5, %s737_s21  ;;  %s60_s17 = int_to_ptr.vmem [resolvable:$true] %s59_s17 }
  0x36   :  { %p741_p11 = scmp.lt.u32.totalorder %s737_s21, %s939_s5 }
  0x38   :  { %p743_p12 = pnand %p741_p11, %p738_p10 }
  0x3a   :  { %746 = shalt.err (!%p743_p12)
}
  0x3b   :  { %s747_s1 = scalar_lea.vmem %s60_s17, 1024  ;;  %p752_p0 = scmp.lt.s32.totalorder %s60_s17, %s60_s17 }
  0x3c   :  { %p748_p13 = scmp.ne.s32.totalorder %s60_s17, %s747_s1  ;;  %p753_p1 = scmp.lt.s32.totalorder %s747_s1, %s747_s1 }
  0x3e   :  { %p754_p2 = por %p753_p1, %p752_p0 }
  0x40   :  { %p755_p3 = pnand %p754_p2, %p748_p13 }
  0x42   :  { %758 = shalt.err (!%p755_p3)
}
  0x43   :  { %65 = dma.hbm_to_vmem [thread:$0]  %s939_s5, 1024, %s60_s17, [#allocation9], %s790_s11, %s790_s11, %s791_s12  }
  0x44   :  { %781 = dma.done.wait [#allocation3], 64  }
  0x45   :  { %782 = vsyncadd [#allocation3], 4294967232 }
  0x46   :  { %783 = dma.done.wait [#allocation6], 3072  }
  0x47   :  { %784 = vsyncadd [#allocation6], 4294964224 }
  0x48   :  { %785 = dma.done.wait [#allocation9], 1024  }
  0x49   :  { %786 = vsyncadd [#allocation9], 4294966272  ;;  %v795_v0 = vmov 0.0   ;;  %v639_v1 = vld [vmem:[#allocation5 + $0x40] sm:$0xff]   ;;  %v641_v3 = vld [vmem:[#allocation5 + $0x48] sm:$0xff]   ;;  %vm796_vm0 = vmmov 0  }
  0x4a   :  { %590 = vmatprep.subr.bf16.mxu1 %v795_v0  ;;  %v640_v2 = vld [vmem:[#allocation5] sm:$0xff]   ;;  %550 = vmatprep.subr.bf16.mxu0 %v639_v1  ;;  %v642_v4 = vld [vmem:[#allocation5 + $0x8] sm:$0xff]   ;;  %v643_v5 = vld [vmem:[#allocation5 + $0x50] sm:$0xff]   ;;  %s797_s28 = smov [#allocation10]  }
  0x4b   :  { %551 = vmatpush3.bf16.msra.mxu0 %v640_v2  ;;  %v644_v6 = vld [vmem:[#allocation5 + $0x10] sm:$0xff]   ;;  %v645_v7 = vld [vmem:[#allocation5 + $0x58] sm:$0xff]   ;;  %v647_v9 = vld [vmem:[#allocation5 + $0x60] sm:$0xff]   ;;  %606 = vmatprep.mubr.msk.bf16.mxu1 %vm796_vm0, %v795_v0  ;;  %s503_s29 = sshll.u32 %s797_s28, 4  ;;  %s504_s29 = int_to_ptr.vmem [resolvable:$true] %s503_s29 }
  0x4c   :  { %552 = vmatprep.subr.bf16.mxu0 %v641_v3  ;;  %v646_v8 = vld [vmem:[#allocation5 + $0x18] sm:$0xff]   ;;  %v648_v10 = vld [vmem:[#allocation5 + $0x20] sm:$0xff]   ;;  %v649_v11 = vld [vmem:[#allocation5 + $0x68] sm:$0xff]   ;;  %p764_p5 = scmp.lt.s32.totalorder %s504_s29, %s504_s29 }
  0x4d   :  { %v514_v12 = vld.sshfl [vmem:[#allocation2] sm:$0x33 pattern:$0x76325410]  ;;  %v655_v14 = vld [vmem:[#allocation7] sm:$0xff]   ;;  %v650_v15 = vld [vmem:[#allocation5 + $0x28] sm:$0xff]  }
  0x4e   :  { %v90_v13 = vcombine.high %v514_v12, %v514_v12  ;;  %591 = vmatpush3.bf16.msra.mxu1 %v655_v14  ;;  %v656_v17 = vld [vmem:[#allocation7 + $0x8] sm:$0xff]   ;;  %v651_v18 = vld [vmem:[#allocation5 + $0x70] sm:$0xff]   ;;  %v653_v20 = vld [vmem:[#allocation5 + $0x78] sm:$0xff]   ;;  %v93_v24 = vpack.c.bf16 %v514_v12, %v514_v12 }
  0x4f   :  { %553 = vmatpush3.bf16.msra.mxu0 %v642_v4  ;;  %592 = vmatprep.subr.bf16.mxu1 %v795_v0  ;;  %v652_v19 = vld [vmem:[#allocation5 + $0x30] sm:$0xff]   ;;  %v654_v22 = vld [vmem:[#allocation5 + $0x38] sm:$0xff]   ;;  %v659_v25 = vld [vmem:[#allocation7 + $0x20] sm:$0xff]  }
  0x50   :  { %554 = vmatprep.subr.bf16.mxu0 %v643_v5  ;;  %v94_v16 = vpack.c.bf16 %v90_v13, %v90_v13  ;;  %v657_v21 = vld [vmem:[#allocation7 + $0x10] sm:$0xff]   ;;  %v658_v23 = vld [vmem:[#allocation7 + $0x18] sm:$0xff]   ;;  %v660_v26 = vld [vmem:[#allocation7 + $0x28] sm:$0xff]  }
  0x51   :  { %v661_v27 = vld [vmem:[#allocation7 + $0x30] sm:$0xff]   ;;  %v662_v28 = vld [vmem:[#allocation7 + $0x38] sm:$0xff]   ;;  %v663_v29 = vld [vmem:[#allocation8] sm:$0xff]  }
  0x52   :  { %262 = vmatprep.mubr.bf16.mxu0 %v94_v16  ;;  %593 = vmatpush3.bf16.msra.mxu1 %v656_v17  ;;  %v664_v30 = vld [vmem:[#allocation8 + $0x8] sm:$0xff]   ;;  %v665_v31 = vld [vmem:[#allocation8 + $0x10] sm:$0xff]   ;;  %v666_v32 = vld [vmem:[#allocation8 + $0x18] sm:$0xff]  }
  0x53   :  { %555 = vmatpush3.bf16.msra.mxu0 %v644_v6  ;;  %594 = vmatprep.subr.bf16.mxu1 %v795_v0  ;;  %v667_v33 = vld [vmem:[#allocation8 + $0x20] sm:$0xff]   ;;  %v668_v34 = vld [vmem:[#allocation8 + $0x28] sm:$0xff]   ;;  %v515_v36 = vld [vmem:[%s936_s2] ss:$0 sm:$0xff] }
  0x54   :  { %556 = vmatprep.subr.bf16.mxu0 %v645_v7  ;;  %v669_v44 = vld [vmem:[#allocation8 + $0x30] sm:$0xff]   ;;  %v670_v45 = vld [vmem:[#allocation8 + $0x38] sm:$0xff]  }
  0x55   :  { %v532_v46 = vld [vmem:[%s938_s4] ss:$0 sm:$0xff]  ;;  %s759_s4 = scalar_lea.vmem %s504_s29, 32 }
  0x56   :  { %595 = vmatpush3.bf16.msra.mxu1 %v657_v21  ;;  %v541_v54 = vld [vmem:[%s940_s6] ss:$0 sm:$0xff]  ;;  %p760_p4 = scmp.ne.s32.totalorder %s504_s29, %s759_s4  ;;  %p765_p6 = scmp.lt.s32.totalorder %s759_s4, %s759_s4 }
  0x57   :  { %557 = vmatpush3.bf16.msra.mxu0 %v646_v8  ;;  %596 = vmatprep.subr.bf16.mxu1 %v795_v0 }
  0x58   :  { %558 = vmatprep.subr.bf16.mxu0 %v647_v9  ;;  %p766_p7 = por %p765_p6, %p764_p5 }
  0x5a   :  { %597 = vmatpush3.bf16.msra.mxu1 %v658_v23  ;;  %p767_p8 = pnand %p766_p7, %p760_p4 }
  0x5b   :  { %559 = vmatpush3.bf16.msra.mxu0 %v648_v10  ;;  %598 = vmatprep.subr.bf16.mxu1 %v795_v0 }
  0x5c   :  { %560 = vmatprep.subr.bf16.mxu0 %v649_v11 }
  0x5e   :  { %599 = vmatpush3.bf16.msra.mxu1 %v659_v25 }
  0x5f   :  { %561 = vmatpush3.bf16.msra.mxu0 %v650_v15  ;;  %600 = vmatprep.subr.bf16.mxu1 %v795_v0 }
  0x60   :  { %562 = vmatprep.subr.bf16.mxu0 %v651_v18 }
  0x62   :  { %601 = vmatpush3.bf16.msra.mxu1 %v660_v26 }
  0x63   :  { %563 = vmatpush3.bf16.msra.mxu0 %v652_v19  ;;  %602 = vmatprep.subr.bf16.mxu1 %v795_v0 }
  0x64   :  { %564 = vmatprep.subr.bf16.mxu0 %v653_v20 }
  0x66   :  { %603 = vmatpush3.bf16.msra.mxu1 %v661_v27 }
  0x67   :  { %565 = vmatpush3.bf16.msra.mxu0 %v654_v22  ;;  %604 = vmatprep.subr.bf16.mxu1 %v795_v0 }
  0x68   :  { %610 = vmatprep.subr.bf16.mxu0 %v795_v0 }
  0x6a   :  { %263 = vmatmul.mubr.bf16.vlgmr.msra.gmra.mrb[0].mxu0 %v93_v24  ;;  %605 = vmatpush3.bf16.msra.mxu1 %v662_v28 }
  0x6b   :  { %626 = vmatprep.mubr.msk.bf16.mxu0 %vm796_vm0, %v795_v0  ;;  %611 = vmatpush3.bf16.msra.mxu0 %v663_v29 }
  0x6c   :  { %612 = vmatprep.subr.bf16.mxu0 %v795_v0 }
  0x6f   :  { %613 = vmatpush3.bf16.msra.mxu0 %v664_v30 }
  0x70   :  { %614 = vmatprep.subr.bf16.mxu0 %v795_v0 }
  0x73   :  { %615 = vmatpush3.bf16.msra.mxu0 %v665_v31 }
  0x74   :  { %616 = vmatprep.subr.bf16.mxu0 %v795_v0 }
  0x77   :  { %617 = vmatpush3.bf16.msra.mxu0 %v666_v32 }
  0x78   :  { %618 = vmatprep.subr.bf16.mxu0 %v795_v0 }
  0x7b   :  { %619 = vmatpush3.bf16.msra.mxu0 %v667_v33 }
  0x7c   :  { %620 = vmatprep.subr.bf16.mxu0 %v795_v0 }
  0x7f   :  { %621 = vmatpush3.bf16.msra.mxu0 %v668_v34 }
  0x80   :  { %622 = vmatprep.subr.bf16.mxu0 %v795_v0 }
  0x83   :  { %623 = vmatpush3.bf16.msra.mxu0 %v669_v44 }
  0x84   :  { %624 = vmatprep.subr.bf16.mxu0 %v795_v0 }
  0x87   :  { %625 = vmatpush3.bf16.msra.mxu0 %v670_v45 }
 0x13d   :  { %v566_v35 = vpop.f32.mrb[0].mxu0 }
 0x13e   :  { %v567_v37 = vpop.f32.mrb[1].mxu0 }
 0x13f   :  { %v568_v38 = vadd.f32 %v567_v37, %v566_v35  ;;  %v569_v39 = vpop.f32.mrb[2].mxu0 }
 0x140   :  { %v570_v40 = vpop.f32.mrb[3].mxu0 }
 0x141   :  { %v265_v41 = vadd.f32 %v568_v38, %v515_v36 }
 0x143   :  { %v270_v42 = vmax.f32 %v265_v41, 0.0 }
 0x145   :  { %v271_v43 = vpack.c.bf16 %v270_v42, %v270_v42 }
 0x147   :  { %607 = vmatmul.mubr.bf16.vlgmr.msra.gmra.mrb[0].mxu1 %v271_v43 }
 0x21a   :  { %v377_v47 = vpop.f32.mrb[0].mxu1 }
 0x21b   :  { %v378_v48 = vadd.f32 %v532_v46, %v377_v47  ;;  %v608_v49 = vpop.f32.mrb[1].mxu1 }
 0x21c   :  { %v380_v50 = vpop.f32.mrb[2].mxu1 }
 0x21d   :  { %v383_v51 = vmax.f32 %v378_v48, 0.0  ;;  %v609_v52 = vpop.f32.mrb[3].mxu1 }
 0x21f   :  { %v384_v53 = vpack.c.bf16 %v383_v51, %v383_v51 }
 0x221   :  { %627 = vmatmul.mubr.bf16.vlgmr.msra.gmra.mrb[4].mxu0 %v384_v53 }
 0x2f4   :  { %v490_v55 = vpop.f32.mrb[4].mxu0 }
 0x2f5   :  { %v491_v56 = vadd.f32 %v541_v54, %v490_v55  ;;  %v628_v57 = vpop.f32.mrb[5].mxu0 }
 0x2f6   :  { %v493_v58 = vpop.f32.mrb[6].mxu0 }
 0x2f7   :  { %496 = vst [vmem:[#allocation10] sm:$0x3] %v491_v56  ;;  %v629_v59 = vpop.f32.mrb[7].mxu0 }
 0x2f8   :  { %770 = shalt.err (!%p767_p8)
}
 0x2f9   :  { %s771_s6 = scalar_lea.hbm %s941_s7, 32 }
 0x2fa   :  { %p772_p9 = scmp.ne.s32.totalorder %s941_s7, %s771_s6  ;;  %p775_p10 = scmp.lt.u32.totalorder %s771_s6, %s941_s7 }
 0x2fc   :  { %p777_p11 = pnand %p775_p10, %p772_p9 }
 0x2fe   :  { %780 = shalt.err (!%p777_p11)
}
 0x2ff   :  { %506 = dma.vmem_to_hbm [thread:$0]  %s504_s29, 32, %s941_s7, [#allocation4]  }
 0x300   :  { %787 = dma.done.wait [#allocation4], 32  }
 0x301   :  { %788 = vsyncadd [#allocation4], 4294967264 }
 0x302   :  { %510 = vsyncpa [#allocation3], 1 }
 0x303   :  { %511 = vsyncpa [#allocation6], 1 }
 0x304   :  { %512 = vsyncpa [#allocation9], 1 }
 0x305   :  { %513 = vsyncpa [#allocation4], 1 }

</bundles_post_ra>
